<compile_context>
chip_gen: v7x
topology: tpu7x:2x2x1
jax: 0.10.0
libtpu: 0.0.40
codegen_flags: <defaults>
</compile_context>

<pallas_src>
import jax
import jax.numpy as jnp
from jax.experimental import pallas as pl
from jax.experimental.pallas import tpu as pltpu

VOCAB = 12      # nn.Embedding(12, 2)
EMBED = 2       # self.embed_length = 2
PATTERN = 4     # per-position output pattern: (appl_0, appl_1, tf_0, tf_1)


def _cdiv(a, b):
    return -(-a // b)


def signature_kernel(sig_ref, tab_ref, out_ref):
    # sig_ref : (RB, LANE) f32  lane-expanded signature fractions; flat element n has
    #           pattern slot r = n % 4 and carries the "applicable" fraction for
    #           r in {0,1} and the "tf" fraction for r in {2,3}.
    # tab_ref : (12, LANE) f32  fused embedding table, tiled so column j holds
    #           fused_table[:, j % 4] with fused_table = [appl | tf]  (12, 4).
    # out_ref : (RB, LANE) f32  embedding values already in the final flat layout.
    sig = sig_ref[...]

    # quantize: torch.where(sig < 1e-8, 0, (sig*10).floor() + 1); kept in f32 (0..11).
    q = jnp.where(sig < 1e-8, 0.0, jnp.floor(sig * 10.0) + 1.0)

    # 12-way VPU select-"gather": compare + select per vocab entry, no MXU, no concat.
    acc = jnp.zeros_like(sig)
    for v in range(VOCAB):                                  # static unroll
        acc = jnp.where(q == float(v), tab_ref[v:v + 1, :], acc)
    out_ref[...] = acc


def _tiling(n_elems):
    """Pick (lane_width, rows_per_block, grid_steps) for n_elems f32 elements."""
    lane = 512 if n_elems >= 512 * 64 else 128      # multiple of 128 and of PATTERN
    rows = _cdiv(n_elems, lane)
    # rows per block: multiple of 8 sublanes, capped for VMEM, and (when possible)
    # small enough that the grid has >= 2 parallel steps (v7x has 2 TensorCores).
    rb = min(1024, max(8, _cdiv(_cdiv(rows, 2), 8) * 8))
    return lane, rb, _cdiv(rows, rb)


def signature_forward(signatures, tab_applicable, tab_tf):
    """signatures: [B, L, 2] float32 -> [B, L*4] float32 (== torch forward output)."""
    B, L, tuple_len = signatures.shape
    assert tuple_len == 2
    n = B * L * PATTERN

    # ---- layout plumbing (XLA side: one elementwise repeat + free reshapes) ----
    # Each fraction drives two embedding coordinates; expanding it here (x2 lanes)
    # keeps the kernel purely elementwise and its output already in the final
    # [a0, a1, t0, t1]-per-position flat order.
    sig_exp = jnp.repeat(signatures, EMBED, axis=2).reshape(-1)        # (n,)

    lane, rb, steps = _tiling(n)
    padded = steps * rb * lane
    sig2d = jnp.pad(sig_exp, (0, padded - n)).reshape(steps * rb, lane)

    # Fused embedding table tiled to the per-lane pattern (period 4 divides `lane`).
    fused = jnp.concatenate([tab_applicable, tab_tf], axis=1)          # (12, 4)
    coltab = jnp.tile(fused, (1, lane // PATTERN))                     # (12, lane)

    out = pl.pallas_call(
        signature_kernel,
        out_shape=jax.ShapeDtypeStruct((steps * rb, lane), jnp.float32),
        grid=(steps,),
        in_specs=[
            pl.BlockSpec((rb, lane), lambda i: (i, 0)),
            # constant block index -> table DMA'd once, stays VMEM-resident
            pl.BlockSpec((VOCAB, lane), lambda i: (0, 0)),
        ],
        out_specs=pl.BlockSpec((rb, lane), lambda i: (i, 0)),
        compiler_params=pltpu.CompilerParams(
            dimension_semantics=("parallel",)),
    )(sig2d, coltab)

    # equivalent of embed.view(B, -1); strips any padding
    return out.reshape(-1)[:n].reshape(B, L * 2 * EMBED)


def signature_reference(signatures, tab_applicable, tab_tf):
    """Pure-JAX reference matching the PyTorch forward."""
    quant = jnp.floor(signatures * 10.0).astype(jnp.int32) + 1
    q = jnp.where(signatures < 1e-8, 0, quant)                  # (B, L, 2)
    e_a = tab_applicable[q[:, :, 0]]                            # (B, L, 2)
    e_t = tab_tf[q[:, :, 1]]                                    # (B, L, 2)
    embed = jnp.stack([e_a, e_t], axis=2)                       # (B, L, 2, 2)
    return embed.reshape(signatures.shape[0], -1)


if __name__ == "__main__":
    key = jax.random.PRNGKey(0)
    k_sig, k_a, k_t, k_sig2 = jax.random.split(key, 4)

    # deterministic "embedding weights" (nn.Embedding default init ~ N(0,1))
    tab_applicable = jax.random.normal(k_a, (VOCAB, EMBED), dtype=jnp.float32)
    tab_tf = jax.random.normal(k_t, (VOCAB, EMBED), dtype=jnp.float32)

    # module-sized case: batch=2, len_signature=8, tuple slots=2
    B, L = 2, 8
    signatures = jax.random.uniform(k_sig, (B, L, 2), dtype=jnp.float32)
    signatures = signatures.at[0, 0, 0].set(0.0).at[1, 3, 1].set(0.0)  # exercise < 1e-8 branch

    out = jax.block_until_ready(signature_forward(signatures, tab_applicable, tab_tf))
    ref = signature_reference(signatures, tab_applicable, tab_tf)
    assert out.shape == (B, L * 2 * EMBED), out.shape
    assert jnp.allclose(out, ref, atol=1e-6), "small-case mismatch vs reference"

    # slightly larger case to exercise the multi-step ('parallel') grid path
    B2, L2 = 64, 8
    signatures2 = jax.random.uniform(k_sig2, (B2, L2, 2), dtype=jnp.float32)
    out2 = jax.block_until_ready(signature_forward(signatures2, tab_applicable, tab_tf))
    ref2 = signature_reference(signatures2, tab_applicable, tab_tf)
    assert jnp.allclose(out2, ref2, atol=1e-6), "multi-block mismatch vs reference"

    print("KERNEL_OK")
</pallas_src>

<mosaic_0001>
module attributes {stable_mosaic.version = 11 : i64} {
  func.func @signature_kernel(%arg0: i32, %arg1: memref<8x128xf32, #tpu.memory_space<vmem>>, %arg2: memref<12x128xf32, #tpu.memory_space<vmem>>, %arg3: memref<8x128xf32, #tpu.memory_space<vmem>>) attributes {dimension_semantics = [#tpu.dimension_semantics<parallel>], iteration_bounds = array<i64: 1>, scalar_prefetch = 0 : i64, scratch_operands = 0 : i64, tpu.core_type = #tpu.core_type<tc>, window_params = [{transform_indices = @transform_0, window_bounds = array<i64: 8, 128>}, {pipeline_mode = #tpu.pipeline_mode<synchronous>, transform_indices = @transform_1, window_bounds = array<i64: 12, 128>}, {transform_indices = @transform_2, window_bounds = array<i64: 8, 128>}]} {
    %c0 = arith.constant 0 : index
    %c0_0 = arith.constant 0 : index
    %0 = vector.load %arg1[%c0, %c0_0] : memref<8x128xf32, #tpu.memory_space<vmem>>, vector<8x128xf32>
    %cst = arith.constant 9.99999993E-9 : f32
    %1 = vector.broadcast %cst : f32 to vector<8x128xf32>
    %2 = arith.cmpf olt, %0, %1 : vector<8x128xf32>
    %cst_1 = arith.constant 1.000000e+01 : f32
    %3 = vector.broadcast %cst_1 : f32 to vector<8x128xf32>
    %4 = arith.mulf %0, %3 : vector<8x128xf32>
    %5 = math.floor %4 : vector<8x128xf32>
    %cst_2 = arith.constant 1.000000e+00 : f32
    %6 = vector.broadcast %cst_2 : f32 to vector<8x128xf32>
    %7 = arith.addf %5, %6 : vector<8x128xf32>
    %cst_3 = arith.constant 0.000000e+00 : f32
    %8 = vector.broadcast %cst_3 : f32 to vector<8x128xf32>
    %9 = arith.select %2, %8, %7 : vector<8x128xi1>, vector<8x128xf32>
    %cst_4 = arith.constant 0.000000e+00 : f32
    %10 = vector.broadcast %cst_4 : f32 to vector<8x128xf32>
    %cst_5 = arith.constant 0.000000e+00 : f32
    %11 = vector.broadcast %cst_5 : f32 to vector<8x128xf32>
    %12 = arith.cmpf oeq, %9, %11 : vector<8x128xf32>
    %c0_6 = arith.constant 0 : index
    %c0_7 = arith.constant 0 : index
    %13 = vector.load %arg2[%c0_6, %c0_7] : memref<12x128xf32, #tpu.memory_space<vmem>>, vector<1x128xf32>
    %14 = vector.shape_cast %13 : vector<1x128xf32> to vector<1x128xf32>
    %15 = vector.broadcast %14 : vector<1x128xf32> to vector<8x128xf32>
    %16 = arith.select %12, %15, %10 : vector<8x128xi1>, vector<8x128xf32>
    %cst_8 = arith.constant 1.000000e+00 : f32
    %17 = vector.broadcast %cst_8 : f32 to vector<8x128xf32>
    %18 = arith.cmpf oeq, %9, %17 : vector<8x128xf32>
    %c1 = arith.constant 1 : index
    %c0_9 = arith.constant 0 : index
    %19 = vector.load %arg2[%c1, %c0_9] : memref<12x128xf32, #tpu.memory_space<vmem>>, vector<1x128xf32>
    %20 = vector.shape_cast %19 : vector<1x128xf32> to vector<1x128xf32>
    %21 = vector.broadcast %20 : vector<1x128xf32> to vector<8x128xf32>
    %22 = arith.select %18, %21, %16 : vector<8x128xi1>, vector<8x128xf32>
    %cst_10 = arith.constant 2.000000e+00 : f32
    %23 = vector.broadcast %cst_10 : f32 to vector<8x128xf32>
    %24 = arith.cmpf oeq, %9, %23 : vector<8x128xf32>
    %c2 = arith.constant 2 : index
    %c0_11 = arith.constant 0 : index
    %25 = vector.load %arg2[%c2, %c0_11] : memref<12x128xf32, #tpu.memory_space<vmem>>, vector<1x128xf32>
    %26 = vector.shape_cast %25 : vector<1x128xf32> to vector<1x128xf32>
    %27 = vector.broadcast %26 : vector<1x128xf32> to vector<8x128xf32>
    %28 = arith.select %24, %27, %22 : vector<8x128xi1>, vector<8x128xf32>
    %cst_12 = arith.constant 3.000000e+00 : f32
    %29 = vector.broadcast %cst_12 : f32 to vector<8x128xf32>
    %30 = arith.cmpf oeq, %9, %29 : vector<8x128xf32>
    %c3 = arith.constant 3 : index
    %c0_13 = arith.constant 0 : index
    %31 = vector.load %arg2[%c3, %c0_13] : memref<12x128xf32, #tpu.memory_space<vmem>>, vector<1x128xf32>
    %32 = vector.shape_cast %31 : vector<1x128xf32> to vector<1x128xf32>
    %33 = vector.broadcast %32 : vector<1x128xf32> to vector<8x128xf32>
    %34 = arith.select %30, %33, %28 : vector<8x128xi1>, vector<8x128xf32>
    %cst_14 = arith.constant 4.000000e+00 : f32
    %35 = vector.broadcast %cst_14 : f32 to vector<8x128xf32>
    %36 = arith.cmpf oeq, %9, %35 : vector<8x128xf32>
    %c4 = arith.constant 4 : index
    %c0_15 = arith.constant 0 : index
    %37 = vector.load %arg2[%c4, %c0_15] : memref<12x128xf32, #tpu.memory_space<vmem>>, vector<1x128xf32>
    %38 = vector.shape_cast %37 : vector<1x128xf32> to vector<1x128xf32>
    %39 = vector.broadcast %38 : vector<1x128xf32> to vector<8x128xf32>
    %40 = arith.select %36, %39, %34 : vector<8x128xi1>, vector<8x128xf32>
    %cst_16 = arith.constant 5.000000e+00 : f32
    %41 = vector.broadcast %cst_16 : f32 to vector<8x128xf32>
    %42 = arith.cmpf oeq, %9, %41 : vector<8x128xf32>
    %c5 = arith.constant 5 : index
    %c0_17 = arith.constant 0 : index
    %43 = vector.load %arg2[%c5, %c0_17] : memref<12x128xf32, #tpu.memory_space<vmem>>, vector<1x128xf32>
    %44 = vector.shape_cast %43 : vector<1x128xf32> to vector<1x128xf32>
    %45 = vector.broadcast %44 : vector<1x128xf32> to vector<8x128xf32>
    %46 = arith.select %42, %45, %40 : vector<8x128xi1>, vector<8x128xf32>
    %cst_18 = arith.constant 6.000000e+00 : f32
    %47 = vector.broadcast %cst_18 : f32 to vector<8x128xf32>
    %48 = arith.cmpf oeq, %9, %47 : vector<8x128xf32>
    %c6 = arith.constant 6 : index
    %c0_19 = arith.constant 0 : index
    %49 = vector.load %arg2[%c6, %c0_19] : memref<12x128xf32, #tpu.memory_space<vmem>>, vector<1x128xf32>
    %50 = vector.shape_cast %49 : vector<1x128xf32> to vector<1x128xf32>
    %51 = vector.broadcast %50 : vector<1x128xf32> to vector<8x128xf32>
    %52 = arith.select %48, %51, %46 : vector<8x128xi1>, vector<8x128xf32>
    %cst_20 = arith.constant 7.000000e+00 : f32
    %53 = vector.broadcast %cst_20 : f32 to vector<8x128xf32>
    %54 = arith.cmpf oeq, %9, %53 : vector<8x128xf32>
    %c7 = arith.constant 7 : index
    %c0_21 = arith.constant 0 : index
    %55 = vector.load %arg2[%c7, %c0_21] : memref<12x128xf32, #tpu.memory_space<vmem>>, vector<1x128xf32>
    %56 = vector.shape_cast %55 : vector<1x128xf32> to vector<1x128xf32>
    %57 = vector.broadcast %56 : vector<1x128xf32> to vector<8x128xf32>
    %58 = arith.select %54, %57, %52 : vector<8x128xi1>, vector<8x128xf32>
    %cst_22 = arith.constant 8.000000e+00 : f32
    %59 = vector.broadcast %cst_22 : f32 to vector<8x128xf32>
    %60 = arith.cmpf oeq, %9, %59 : vector<8x128xf32>
    %c8 = arith.constant 8 : index
    %c0_23 = arith.constant 0 : index
    %61 = vector.load %arg2[%c8, %c0_23] : memref<12x128xf32, #tpu.memory_space<vmem>>, vector<1x128xf32>
    %62 = vector.shape_cast %61 : vector<1x128xf32> to vector<1x128xf32>
    %63 = vector.broadcast %62 : vector<1x128xf32> to vector<8x128xf32>
    %64 = arith.select %60, %63, %58 : vector<8x128xi1>, vector<8x128xf32>
    %cst_24 = arith.constant 9.000000e+00 : f32
    %65 = vector.broadcast %cst_24 : f32 to vector<8x128xf32>
    %66 = arith.cmpf oeq, %9, %65 : vector<8x128xf32>
    %c9 = arith.constant 9 : index
    %c0_25 = arith.constant 0 : index
    %67 = vector.load %arg2[%c9, %c0_25] : memref<12x128xf32, #tpu.memory_space<vmem>>, vector<1x128xf32>
    %68 = vector.shape_cast %67 : vector<1x128xf32> to vector<1x128xf32>
    %69 = vector.broadcast %68 : vector<1x128xf32> to vector<8x128xf32>
    %70 = arith.select %66, %69, %64 : vector<8x128xi1>, vector<8x128xf32>
    %cst_26 = arith.constant 1.000000e+01 : f32
    %71 = vector.broadcast %cst_26 : f32 to vector<8x128xf32>
    %72 = arith.cmpf oeq, %9, %71 : vector<8x128xf32>
    %c10 = arith.constant 10 : index
    %c0_27 = arith.constant 0 : index
    %73 = vector.load %arg2[%c10, %c0_27] : memref<12x128xf32, #tpu.memory_space<vmem>>, vector<1x128xf32>
    %74 = vector.shape_cast %73 : vector<1x128xf32> to vector<1x128xf32>
    %75 = vector.broadcast %74 : vector<1x128xf32> to vector<8x128xf32>
    %76 = arith.select %72, %75, %70 : vector<8x128xi1>, vector<8x128xf32>
    %cst_28 = arith.constant 1.100000e+01 : f32
    %77 = vector.broadcast %cst_28 : f32 to vector<8x128xf32>
    %78 = arith.cmpf oeq, %9, %77 : vector<8x128xf32>
    %c11 = arith.constant 11 : index
    %c0_29 = arith.constant 0 : index
    %79 = vector.load %arg2[%c11, %c0_29] : memref<12x128xf32, #tpu.memory_space<vmem>>, vector<1x128xf32>
    %80 = vector.shape_cast %79 : vector<1x128xf32> to vector<1x128xf32>
    %81 = vector.broadcast %80 : vector<1x128xf32> to vector<8x128xf32>
    %82 = arith.select %78, %81, %76 : vector<8x128xi1>, vector<8x128xf32>
    %c0_30 = arith.constant 0 : index
    %c0_31 = arith.constant 0 : index
    %83 = vector.load %arg3[%c0_30, %c0_31] : memref<8x128xf32, #tpu.memory_space<vmem>>, vector<8x128xf32>
    tpu.vector_store %arg3[%c0_30, %c0_31], %82 {strides = array<i32>} : memref<8x128xf32, #tpu.memory_space<vmem>>, vector<8x128xf32>,
    return
  }
  func.func @transform_0(%arg0: i32) -> (i32, i32) {
    %c0_i32 = arith.constant 0 : i32
    %c0_i32_0 = arith.constant 0 : i32
    return %arg0, %c0_i32 : i32, i32
  }
  func.func @transform_1(%arg0: i32) -> (i32, i32) {
    %c0_i32 = arith.constant 0 : i32
    %c0_i32_0 = arith.constant 0 : i32
    %c0_i32_1 = arith.constant 0 : i32
    return %c0_i32, %c0_i32_0 : i32, i32
  }
  func.func @transform_2(%arg0: i32) -> (i32, i32) {
    %c0_i32 = arith.constant 0 : i32
    %c0_i32_0 = arith.constant 0 : i32
    return %arg0, %c0_i32 : i32, i32
  }
}

</mosaic_0001>

<bundles_post_ra>
// kernel: tpu_custom_call.1
= control target key start
LH: loop header
LB: loop body
LE: loop exit
PB: predicated region body
PF: predicated region fallthrough
CT: control target
= control target key end

     0   :  { %7 = vsyncpa [#allocation3], 0  ;;  %s297_s0 = inlined_call_operand.hbm [shape: f32[8,128], index: 0, kind: input, shape index: {}]   ;;  %s298_s1 = inlined_call_operand.hbm [shape: f32[12,128], index: 1, kind: input, shape index: {}]   ;;  %s299_s2 = inlined_call_operand.hbm [shape: f32[8,128], index: 2, kind: output, shape index: {}]  }
   0x1   :  { %8 = vsyncpa [#allocation6], 0 }
   0x2   :  { %9 = vsyncpa [#allocation4], 0  ;;  %s234_s9 = smov [#allocation2]   ;;  %s235_s11 = smov [#allocation5]  }
   0x3   :  { %s16_s10 = sshll.u32 %s234_s9, 4  ;;  %s25_s12 = sshll.u32 %s235_s11, 4  ;;  %s17_s10 = int_to_ptr.vmem [resolvable:$true] %s16_s10  ;;  %s254_s12 = int_to_ptr.vmem [resolvable:$true] %s25_s12 }
   0x4   :  { %s162_s15 = scalar_lea.hbm %s297_s0, 128 }
   0x5   :  { %p163_p0 = scmp.ne.s32.totalorder %s297_s0, %s162_s15  ;;  %p166_p1 = scmp.lt.u32.totalorder %s162_s15, %s297_s0 }
   0x7   :  { %p168_p2 = pnand %p166_p1, %p163_p0 }
   0x9   :  { %171 = shalt.err (!%p168_p2)
}
   0xa   :  { %s172_s20 = scalar_lea.vmem %s17_s10, 128  ;;  %p177_p4 = scmp.lt.s32.totalorder %s17_s10, %s17_s10 }
   0xb   :  { %p173_p3 = scmp.ne.s32.totalorder %s17_s10, %s172_s20  ;;  %p178_p5 = scmp.lt.s32.totalorder %s172_s20, %s172_s20 }
   0xd   :  { %p179_p6 = por %p178_p5, %p177_p4 }
   0xf   :  { %p180_p7 = pnand %p179_p6, %p173_p3 }
  0x11   :  { %183 = shalt.err (!%p180_p7)
}
  0x12   :  { %19 = dma.hbm_to_vmem [thread:$0]  %s297_s0, 128, %s17_s10, [#allocation3]  }
  0x13   :  { %s184_s25 = scalar_lea.hbm %s298_s1, 256 }
  0x14   :  { %p185_p8 = scmp.ne.s32.totalorder %s298_s1, %s184_s25  ;;  %p188_p9 = scmp.lt.u32.totalorder %s184_s25, %s298_s1 }
  0x16   :  { %p190_p10 = pnand %p188_p9, %p185_p8 }
  0x18   :  { %193 = shalt.err (!%p190_p10)
}
  0x19   :  { %s194_s30 = scalar_lea.vmem %s254_s12, 256  ;;  %p199_p12 = scmp.lt.s32.totalorder %s254_s12, %s254_s12 }
  0x1a   :  { %p195_p11 = scmp.ne.s32.totalorder %s254_s12, %s194_s30  ;;  %p200_p13 = scmp.lt.s32.totalorder %s194_s30, %s194_s30 }
  0x1c   :  { %p201_p0 = por %p200_p13, %p199_p12 }
  0x1e   :  { %p202_p1 = pnand %p201_p0, %p195_p11 }
  0x20   :  { %205 = shalt.err (!%p202_p1)
}
  0x21   :  { %s236_s0 = smov 128   ;;  %s237_s3 = smov 8  }
  0x22   :  { %31 = dma.hbm_to_vmem [thread:$0]  %s298_s1, 256, %s254_s12, [#allocation6], %s236_s0, %s236_s0, %s237_s3  }
  0x23   :  { %228 = dma.done.wait [#allocation3], 128  }
  0x24   :  { %229 = vsyncadd [#allocation3], 4294967168 }
  0x25   :  { %230 = dma.done.wait [#allocation6], 256  }
  0x26   :  { %231 = vsyncadd [#allocation6], 4294967040  ;;  %v38_v0 = vld [vmem:[#allocation2] sm:$0xff]  ;;  %v145_v4 = vld [vmem:[#allocation5] ss:$0 sm:$0xff]  ;;  %s238_s1 = smov [#allocation7]  }
  0x27   :  { %v40_v1 = vmul.f32 10.0, %v38_v0  ;;  %vm39_vm0 = vcmp.lt.f32.partialorder %v38_v0, 1e-08  ;;  %v146_v6 = vld [vmem:[#allocation5 + $0x1] ss:$0 sm:$0xff]  ;;  %s135_s6 = sshll.u32 %s238_s1, 4  ;;  %s136_s6 = int_to_ptr.vmem [resolvable:$true] %s135_s6 }
  0x28   :  { %v147_v7 = vld [vmem:[#allocation5 + $0x2] ss:$0 sm:$0xff]  ;;  %v148_v9 = vld [vmem:[#allocation5 + $0x3] ss:$0 sm:$0xff]  ;;  %v149_v11 = vld [vmem:[#allocation5 + $0x4] ss:$0 sm:$0xff]  ;;  %p211_p3 = scmp.lt.s32.totalorder %s136_s6, %s136_s6 }
  0x29   :  { %v41_v2 = vfloor.f32 %v40_v1  ;;  %v150_v13 = vld [vmem:[#allocation5 + $0x5] ss:$0 sm:$0xff]  ;;  %v151_v15 = vld [vmem:[#allocation5 + $0x6] ss:$0 sm:$0xff]  ;;  %v152_v17 = vld [vmem:[#allocation5 + $0x7] ss:$0 sm:$0xff] }
  0x2a   :  { %v153_v19 = vld [vmem:[#allocation5 + $0x8] ss:$0 sm:$0xff]  ;;  %v154_v21 = vld [vmem:[#allocation5 + $0x9] ss:$0 sm:$0xff]  ;;  %v155_v23 = vld [vmem:[#allocation5 + $0xa] ss:$0 sm:$0xff] }
  0x2b   :  { %v42_v3 = vadd.f32 1.0, %v41_v2  ;;  %v156_v25 = vld [vmem:[#allocation5 + $0xb] ss:$0 sm:$0xff]  ;;  %s206_s7 = scalar_lea.vmem %s136_s6, 128 }
  0x2c   :  { %p207_p2 = scmp.ne.s32.totalorder %s136_s6, %s206_s7  ;;  %p212_p4 = scmp.lt.s32.totalorder %s206_s7, %s206_s7 }
  0x2d   :  { %v43_v5 = vsel %vm39_vm0, 0.0, %v42_v3 }
  0x2e   :  { %vm44_vm1 = vcmp.eq.f32.partialorder %v43_v5, 0.0  ;;  %vm51_vm2 = vcmp.eq.f32.partialorder %v43_v5, 1.0  ;;  %vm58_vm3 = vcmp.eq.f32.partialorder %v43_v5, 2.0  ;;  %vm65_vm4 = vcmp.eq.f32.partialorder %v43_v5, 3.0  ;;  %p213_p5 = por %p212_p4, %p211_p3 }
  0x2f   :  { %v50_v8 = vsel %vm44_vm1, %v145_v4, 0.0  ;;  %vm72_vm5 = vcmp.eq.f32.partialorder %v43_v5, 4.0  ;;  %vm79_vm6 = vcmp.eq.f32.partialorder %v43_v5, 5.0  ;;  %vm86_vm7 = vcmp.eq.f32.partialorder %v43_v5, 6.0 }
  0x30   :  { %v57_v10 = vsel %vm51_vm2, %v146_v6, %v50_v8  ;;  %vm93_vm8 = vcmp.eq.f32.partialorder %v43_v5, 7.0  ;;  %vm100_vm9 = vcmp.eq.f32.partialorder %v43_v5, 8.0  ;;  %vm107_vm10 = vcmp.eq.f32.partialorder %v43_v5, 9.0  ;;  %p214_p6 = pnand %p213_p5, %p207_p2 }
  0x31   :  { %v64_v12 = vsel %vm58_vm3, %v147_v7, %v57_v10  ;;  %vm114_vm11 = vcmp.eq.f32.partialorder %v43_v5, 10.0  ;;  %vm121_vm12 = vcmp.eq.f32.partialorder %v43_v5, 11.0 }
  0x32   :  { %v71_v14 = vsel %vm65_vm4, %v148_v9, %v64_v12 }
  0x33   :  { %v78_v16 = vsel %vm72_vm5, %v149_v11, %v71_v14 }
  0x34   :  { %v85_v18 = vsel %vm79_vm6, %v150_v13, %v78_v16 }
  0x35   :  { %v92_v20 = vsel %vm86_vm7, %v151_v15, %v85_v18 }
  0x36   :  { %v99_v22 = vsel %vm93_vm8, %v152_v17, %v92_v20 }
  0x37   :  { %v106_v24 = vsel %vm100_vm9, %v153_v19, %v99_v22 }
  0x38   :  { %v113_v26 = vsel %vm107_vm10, %v154_v21, %v106_v24 }
  0x39   :  { %v120_v27 = vsel %vm114_vm11, %v155_v23, %v113_v26 }
  0x3a   :  { %v127_v28 = vsel %vm121_vm12, %v156_v25, %v120_v27 }
  0x3b   :  { %128 = vst [vmem:[#allocation7] sm:$0xff] %v127_v28 }
  0x3c   :  { %217 = shalt.err (!%p214_p6)
}
  0x3d   :  { %s218_s10 = scalar_lea.hbm %s299_s2, 128 }
  0x3e   :  { %p219_p7 = scmp.ne.s32.totalorder %s299_s2, %s218_s10  ;;  %p222_p8 = scmp.lt.u32.totalorder %s218_s10, %s299_s2 }
  0x40   :  { %p224_p9 = pnand %p222_p8, %p219_p7 }
  0x42   :  { %227 = shalt.err (!%p224_p9)
}
  0x43   :  { %138 = dma.vmem_to_hbm [thread:$0]  %s136_s6, 128, %s299_s2, [#allocation4]  }
  0x44   :  { %232 = dma.done.wait [#allocation4], 128  }
  0x45   :  { %233 = vsyncadd [#allocation4], 4294967168 }
  0x46   :  { %142 = vsyncpa [#allocation3], 1 }
  0x47   :  { %143 = vsyncpa [#allocation6], 1 }
  0x48   :  { %144 = vsyncpa [#allocation4], 1 }

</bundles_post_ra>
